<compile_context>
chip_gen: v5e
topology: v5e:2x2
jax: 0.10.0
libtpu: 0.0.40
codegen_flags: <defaults>
</compile_context>

<pallas_src>
import functools

import jax
import jax.numpy as jnp
import numpy as np
from jax.experimental import pallas as pl
from jax.experimental.pallas import tpu as pltpu


# -----------------------------------------------------------------------------
# helpers: per-generation VMEM budget + budget-aware tile pickers
# -----------------------------------------------------------------------------
def _vmem_budget_bytes():
    """Physical VMEM minus headroom (~104 MiB on v5e/v6e, ~40 MiB on v7x)."""
    cap = 64 << 20
    try:
        info = pltpu.get_tpu_info()
        cap_q = int(getattr(info, "vmem_capacity_bytes", 0))
        if cap_q > 0:
            cap = cap_q
    except Exception:
        pass
    return int(min(max(cap - (24 << 20), 32 << 20), cap))


_TILE_CANDIDATES = (1024, 512, 256, 128, 64, 32, 16, 8)


def _divisor_tiles(n):
    c = [t for t in _TILE_CANDIDATES if t <= n and n % t == 0]
    return c if c else [n]


def _pick_query_tile(H, Lq, Lk, d_k, d_v, itemsize, want_attn, budget):
    """Largest query tile whose double-buffered blocks + f32 intermediates fit."""
    tiles = _divisor_tiles(Lq)
    for tq in tiles:
        w = Lk + tq - 1
        blocks = 2 * (2 * H * tq * d_k          # q, q2
                      + H * d_k * Lk            # k^T
                      + H * Lk * d_v            # v
                      + tq * H * d_v)           # out
        if want_attn:
            blocks += 2 * H * tq * Lk
        blocks += 2 * H * (2 * Lk - 1) * d_k    # resident relative-embedding table
        # f32 intermediates Mosaic materializes (skew buffers + scores/exp/probs)
        interm = 4 * H * tq * (2 * w + 3 * Lk + d_v)
        if blocks * itemsize + interm <= budget:
            return tq
    return tiles[-1]


def _pick_row_tile(R, HD, d_model, itemsize, budget):
    tiles = _divisor_tiles(R)
    for tr in tiles:
        need = itemsize * (2 * (tr * HD + 2 * tr * d_model) + 2 * HD * d_model)
        need += 4 * tr * d_model                # f32 accumulator
        if need <= budget:
            return tr
    return tiles[-1]


# -----------------------------------------------------------------------------
# Kernel 1: fused relative attention (all heads of one batch elem, one q tile)
# -----------------------------------------------------------------------------
def _rel_attn_kernel(q_ref, kt_ref, v_ref, q2_ref, e_ref, out_ref, *attn_refs,
                     inv_temp, return_attn):
    H, TQ, d_k = q_ref.shape            # (H, TQ, d_k)
    Lk, d_v = v_ref.shape[1], v_ref.shape[2]
    W = Lk + TQ - 1

    # --- QK^T : 1/temperature folded into the small q tile, K already (d_k, Lk)
    q = q_ref[...] * inv_temp
    scores = jnp.einsum("hqd,hdk->hqk", q, kt_ref[...],
                        preferred_element_type=jnp.float32)        # (H, TQ, Lk)

    # --- fused relative logits: s = q2 . E over this tile's offset window.
    # Window start is 8-aligned whenever TQ is a multiple of 8.
    start = (pl.num_programs(1) - 1 - pl.program_id(1)) * TQ
    if TQ % 8 == 0:
        start = pl.multiple_of(start, 8)
    e_win = e_ref[:, pl.ds(start, W), :]                           # (H, W, d_k)
    s = jnp.einsum("hqd,hwd->hqw", q2_ref[...], e_win,
                   preferred_element_type=jnp.float32)             # (H, TQ, W)

    # --- Shaw skew in-kernel (no HBM rel tensor, no gather):
    #     rel[h, i, j] = s[h, i, j + (TQ - 1 - i)]
    # Per-row left shift via a log2(TQ)-step barrel shifter of static
    # slice+concat shifts selected by iota row masks.
    row = jax.lax.broadcasted_iota(jnp.int32, (1, TQ, 1), 1)
    shift = (TQ - 1) - row                                         # in [0, TQ-1]
    cur = s
    amt = 1
    while amt < TQ:
        zeros = jnp.zeros(cur.shape[:-1] + (amt,), cur.dtype)
        shifted = jnp.concatenate([cur[..., amt:], zeros], axis=-1)
        cur = jnp.where((shift & amt) != 0, shifted, cur)
        amt *= 2
    scores = scores + cur[..., :Lk]

    # --- numerically stable softmax over keys
    m = jnp.max(scores, axis=-1, keepdims=True)
    e = jnp.exp(scores - m)
    denom = jnp.sum(e, axis=-1, keepdims=True)

    v = v_ref[...]
    if return_attn:
        p = e / denom
        ctx = jnp.einsum("hqk,hkd->hqd", p.astype(v.dtype), v,
                         preferred_element_type=jnp.float32)
        attn_refs[0][...] = p.astype(attn_refs[0].dtype)
    else:
        # unnormalized PV, then a cheap (H, TQ, d_v) rescale on the EUP slot
        ctx = jnp.einsum("hqk,hkd->hqd", e.astype(v.dtype), v,
                         preferred_element_type=jnp.float32)
        ctx = ctx * pl.reciprocal(denom, approx=True)

    # --- lane-dense output: (TQ, H * d_v) with head-major columns (like torch)
    merged = jnp.concatenate([ctx[h] for h in range(H)], axis=-1)
    out_ref[...] = merged.astype(out_ref.dtype)


def relative_scaled_dot_product_attention(q, kt, v, q2, rel_emb_scaled,
                                          temperature, *, return_attn=True):
    """q, q2: (H, B, L, d_k); kt: (H, B, d_k, L); v: (H, B, L, d_v);
    rel_emb_scaled: (H, 2L-1, d_k), already divided by temperature.
    Returns (out (B, L, H*d_v), attn (H, B, L, L) or None)."""
    H, B, Lq, d_k = q.shape
    Lk, d_v = v.shape[2], v.shape[3]
    assert kt.shape == (H, B, d_k, Lk)
    assert rel_emb_scaled.shape == (H, 2 * Lk - 1, d_k)
    assert Lq == Lk, "Shaw-skew stand-in assumes self-attention (len_q == len_k)"

    budget = _vmem_budget_bytes()
    itemsize = np.dtype(q.dtype).itemsize
    TQ = _pick_query_tile(H, Lq, Lk, d_k, d_v, itemsize, return_attn, budget)
    grid = (B, Lq // TQ)

    in_specs = [
        pl.BlockSpec((H, None, TQ, d_k), lambda b, qi: (0, b, qi, 0)),    # q
        pl.BlockSpec((H, None, d_k, Lk), lambda b, qi: (0, b, 0, 0)),     # k^T
        pl.BlockSpec((H, None, Lk, d_v), lambda b, qi: (0, b, 0, 0)),     # v
        pl.BlockSpec((H, None, TQ, d_k), lambda b, qi: (0, b, qi, 0)),    # q2
        pl.BlockSpec((H, 2 * Lk - 1, d_k), lambda b, qi: (0, 0, 0)),      # E (resident)
    ]
    out_spec_o = pl.BlockSpec((None, TQ, H * d_v), lambda b, qi: (b, qi, 0))
    out_shape_o = jax.ShapeDtypeStruct((B, Lq, H * d_v), q.dtype)

    kernel = functools.partial(_rel_attn_kernel,
                               inv_temp=float(1.0 / temperature),
                               return_attn=return_attn)
    cparams = pltpu.CompilerParams(
        # batch across cores; query tiles sequential so K/V/E revisit-elision
        # keeps them fetched once per batch element (good for v7x, neutral else)
        dimension_semantics=("parallel", "arbitrary"),
        vmem_limit_bytes=int(budget))

    if return_attn:
        out_specs = (out_spec_o,
                     pl.BlockSpec((H, None, TQ, Lk), lambda b, qi: (0, b, qi, 0)))
        out_shapes = (out_shape_o,
                      jax.ShapeDtypeStruct((H, B, Lq, Lk), q.dtype))
        out, attn = pl.pallas_call(
            kernel, grid=grid, in_specs=in_specs,
            out_specs=out_specs, out_shape=out_shapes,
            compiler_params=cparams,
        )(q, kt, v, q2, rel_emb_scaled)
        return out, attn

    out = pl.pallas_call(
        kernel, grid=grid, in_specs=in_specs,
        out_specs=out_spec_o, out_shape=out_shape_o,
        compiler_params=cparams,
    )(q, kt, v, q2, rel_emb_scaled)
    return out, None


# -----------------------------------------------------------------------------
# Kernel 2: fused fc (single full-depth matmul) + residual add + LayerNorm
# -----------------------------------------------------------------------------
def _fc_res_ln_kernel(x_ref, w_ref, res_ref, g_ref, b_ref, o_ref, *, eps):
    acc = res_ref[...].astype(jnp.float32) + jnp.dot(
        x_ref[...], w_ref[...], preferred_element_type=jnp.float32)
    mean = jnp.mean(acc, axis=-1, keepdims=True)
    var = jnp.mean(jnp.square(acc - mean), axis=-1, keepdims=True)
    normed = (acc - mean) * jax.lax.rsqrt(var + eps)
    o_ref[...] = (normed * g_ref[...].astype(jnp.float32)
                  + b_ref[...].astype(jnp.float32)).astype(o_ref.dtype)


def fc_residual_layernorm(x, w, residual, gamma, beta, eps=1e-5):
    """x: (R, H*d_v); w: (H*d_v, d_model); residual: (R, d_model)."""
    R, HD = x.shape
    d_model = w.shape[1]
    budget = _vmem_budget_bytes()
    TR = _pick_row_tile(R, HD, d_model, np.dtype(x.dtype).itemsize, budget)
    gamma2 = gamma.reshape(1, d_model)
    beta2 = beta.reshape(1, d_model)

    return pl.pallas_call(
        functools.partial(_fc_res_ln_kernel, eps=float(eps)),
        grid=(R // TR,),
        in_specs=[
            pl.BlockSpec((TR, HD), lambda r: (r, 0)),
            pl.BlockSpec((HD, d_model), lambda r: (0, 0)),     # resident weights
            pl.BlockSpec((TR, d_model), lambda r: (r, 0)),
            pl.BlockSpec((1, d_model), lambda r: (0, 0)),
            pl.BlockSpec((1, d_model), lambda r: (0, 0)),
        ],
        out_specs=pl.BlockSpec((TR, d_model), lambda r: (r, 0)),
        out_shape=jax.ShapeDtypeStruct((R, d_model), residual.dtype),
        compiler_params=pltpu.CompilerParams(
            dimension_semantics=("parallel",),
            vmem_limit_bytes=int(budget)),
    )(x, w, residual, gamma2, beta2)


# -----------------------------------------------------------------------------
# Full forward (mirrors RelativeMultiHeadAttention.forward, mask=None, eval)
# -----------------------------------------------------------------------------
def relative_multi_head_attention(params, q_in, k_in, v_in, *, return_attn=True):
    n_head, d_k, d_v = params["n_head"], params["d_k"], params["d_v"]
    sz_b, len_q, d_model = q_in.shape
    _, len_k, _ = k_in.shape
    assert len_q == len_k, "relative-logit stand-in assumes self-attention"

    dt = q_in.dtype
    residual = q_in

    def project(x, w, d, pattern):
        # nn.Linear (no bias) + head split, emitted directly in the target layout.
        w3 = w.reshape(n_head, d, d_model).astype(dt)
        return jnp.einsum(pattern, x, w3)

    q = project(q_in, params["w_qs"], d_k, "bld,hed->hble")     # (H, B, L, d_k)
    q2 = project(q_in, params["w_q2s"], d_k, "bld,hed->hble")   # (H, B, L, d_k)
    kt = project(k_in, params["w_ks"], d_k, "bld,hed->hbel")    # (H, B, d_k, L)
    v = project(v_in, params["w_vs"], d_v, "bld,hed->hble")     # (H, B, L, d_v)

    temperature = float(np.power(d_k, 0.5))
    # rel_attn / temperature folded once into the small embedding table.
    rel_emb_scaled = (params["rel_emb"] * (1.0 / temperature)).astype(dt)

    out_bld, attn = relative_scaled_dot_product_attention(
        q, kt, v, q2, rel_emb_scaled, temperature, return_attn=return_attn)

    # fused fc + residual + LayerNorm; attention output already (B, L, H*d_v)
    out = fc_residual_layernorm(
        out_bld.reshape(sz_b * len_q, n_head * d_v),
        params["w_fc_t"].astype(dt),
        residual.reshape(sz_b * len_q, d_model),
        params["ln_gamma"], params["ln_beta"])
    out = out.reshape(sz_b, len_q, d_model)

    attn_flat = None if attn is None else attn.reshape(n_head * sz_b, len_q, len_k)
    return out, attn_flat


# -----------------------------------------------------------------------------
# Pure-JAX reference (independent path; gather-based relative skew)
# -----------------------------------------------------------------------------
def reference_forward(params, q_in, k_in, v_in, eps=1e-5):
    H, d_k, d_v = params["n_head"], params["d_k"], params["d_v"]
    B, L, d_model = q_in.shape
    residual = q_in

    def proj(x, w, d):
        y = x @ w.T
        return jnp.transpose(y.reshape(B, L, H, d), (2, 0, 1, 3))   # (H, B, L, d)

    q = proj(q_in, params["w_qs"], d_k)
    k = proj(k_in, params["w_ks"], d_k)
    v = proj(v_in, params["w_vs"], d_v)
    q2 = proj(q_in, params["w_q2s"], d_k)

    S = jnp.einsum("hbld,hrd->hblr", q2, params["rel_emb"])
    idx = jnp.arange(L)[None, :] - jnp.arange(L)[:, None] + (L - 1)
    rel = S[:, :, jnp.arange(L)[:, None], idx]                      # (H, B, L, L)

    temp = float(np.power(d_k, 0.5))
    scores = (jnp.einsum("hbqd,hbkd->hbqk", q, k) + rel) / temp
    attn = jax.nn.softmax(scores, axis=-1)
    ctx = jnp.einsum("hbqk,hbkd->hbqd", attn, v)

    merged = jnp.transpose(ctx, (1, 2, 0, 3)).reshape(B, L, H * d_v)
    y = merged @ params["w_fc"].T + residual
    mean = y.mean(-1, keepdims=True)
    var = ((y - mean) ** 2).mean(-1, keepdims=True)
    out = (y - mean) / jnp.sqrt(var + eps) * params["ln_gamma"] + params["ln_beta"]
    return out, attn.reshape(H * B, L, L)


# -----------------------------------------------------------------------------
# Deterministic parameter init (shapes follow the module's __init__)
# -----------------------------------------------------------------------------
def init_params(key, n_head, d_model, d_k, d_v, max_len):
    ks = jax.random.split(key, 6)
    std_qk = np.sqrt(2.0 / (d_model + d_k))
    std_v = np.sqrt(2.0 / (d_model + d_v))
    std_fc = np.sqrt(2.0 / (n_head * d_v + d_model))                # xavier_normal_
    w_fc = jax.random.normal(ks[4], (d_model, n_head * d_v), jnp.float32) * std_fc
    return {
        "n_head": n_head, "d_k": d_k, "d_v": d_v,
        "w_qs": jax.random.normal(ks[0], (n_head * d_k, d_model), jnp.float32) * std_qk,
        "w_ks": jax.random.normal(ks[1], (n_head * d_k, d_model), jnp.float32) * std_qk,
        "w_vs": jax.random.normal(ks[2], (n_head * d_v, d_model), jnp.float32) * std_v,
        "w_q2s": jax.random.normal(ks[3], (n_head * d_k, d_model), jnp.float32) * std_qk,
        "w_fc": w_fc,
        "w_fc_t": jnp.asarray(w_fc.T),          # pre-transposed for fused fc kernel
        "rel_emb": jax.random.normal(ks[5], (n_head, 2 * max_len - 1, d_k),
                                     jnp.float32) * 0.5,
        "ln_gamma": jnp.ones((d_model,), jnp.float32),
        "ln_beta": jnp.zeros((d_model,), jnp.float32),
    }


if __name__ == "__main__":
    # small shapes consistent with the module
    sz_b, seq_len, d_model = 2, 8, 32
    n_head, d_k, d_v = 4, 8, 8

    key = jax.random.PRNGKey(0)
    kp, kq, kk, kv = jax.random.split(key, 4)
    params = init_params(kp, n_head, d_model, d_k, d_v, max_len=seq_len)

    q = jax.random.normal(kq, (sz_b, seq_len, d_model), jnp.float32)
    k = jax.random.normal(kk, (sz_b, seq_len, d_model), jnp.float32)
    v = jax.random.normal(kv, (sz_b, seq_len, d_model), jnp.float32)

    fwd = jax.jit(lambda a, b, c: relative_multi_head_attention(
        params, a, b, c, return_attn=True))
    fwd_fast = jax.jit(lambda a, b, c: relative_multi_head_attention(
        params, a, b, c, return_attn=False))

    out, attn = fwd(q, k, v)
    out = jax.block_until_ready(out)
    attn = jax.block_until_ready(attn)

    out2, _ = fwd_fast(q, k, v)
    out2 = jax.block_until_ready(out2)

    assert out.shape == (sz_b, seq_len, d_model)
    assert attn.shape == (n_head * sz_b, seq_len, seq_len)
    # softmax rows sum to 1
    assert np.allclose(np.asarray(jnp.sum(attn, axis=-1)), 1.0, atol=1e-5)
    # both output paths agree (fast path uses approx reciprocal -> looser)
    assert np.allclose(np.asarray(out), np.asarray(out2), atol=2e-2, rtol=2e-2)

    # cross-check against an independent pure-JAX reference (gather-based skew)
    ref_out, ref_attn = reference_forward(params, q, k, v)
    assert np.allclose(np.asarray(out), np.asarray(ref_out), atol=5e-2, rtol=5e-2)
    assert np.allclose(np.asarray(attn), np.asarray(ref_attn), atol=5e-2, rtol=5e-2)
    assert np.allclose(np.asarray(out2), np.asarray(ref_out), atol=5e-2, rtol=5e-2)

    # bf16 smoke run (halves HBM traffic / doubles MXU rate at real shapes)
    out_bf, _ = jax.jit(lambda a, b, c: relative_multi_head_attention(
        params, a, b, c, return_attn=False))(
        q.astype(jnp.bfloat16), k.astype(jnp.bfloat16), v.astype(jnp.bfloat16))
    out_bf = jax.block_until_ready(out_bf)
    assert out_bf.shape == (sz_b, seq_len, d_model)
    assert out_bf.dtype == jnp.bfloat16
    assert bool(jnp.all(jnp.isfinite(out_bf.astype(jnp.float32))))

    print("KERNEL_OK")
</pallas_src>

<mosaic_0001>
module attributes {stable_mosaic.version = 11 : i64} {
  func.func @_rel_attn_kernel(%arg0: i32, %arg1: i32, %arg2: memref<4x1x8x8xf32, #tpu.memory_space<vmem>>, %arg3: memref<4x1x8x8xf32, #tpu.memory_space<vmem>>, %arg4: memref<4x1x8x8xf32, #tpu.memory_space<vmem>>, %arg5: memref<4x1x8x8xf32, #tpu.memory_space<vmem>>, %arg6: memref<4x15x8xf32, #tpu.memory_space<vmem>>, %arg7: memref<1x8x32xf32, #tpu.memory_space<vmem>>, %arg8: memref<4x1x8x8xf32, #tpu.memory_space<vmem>>) attributes {dimension_semantics = [#tpu.dimension_semantics<parallel>, #tpu.dimension_semantics<arbitrary>], iteration_bounds = array<i64: 2, 1>, scalar_prefetch = 0 : i64, scratch_operands = 0 : i64, tpu.core_type = #tpu.core_type<tc>, window_params = [{transform_indices = @transform_0, window_bounds = array<i64: 4, 1, 8, 8>}, {transform_indices = @transform_1, window_bounds = array<i64: 4, 1, 8, 8>}, {transform_indices = @transform_2, window_bounds = array<i64: 4, 1, 8, 8>}, {transform_indices = @transform_3, window_bounds = array<i64: 4, 1, 8, 8>}, {pipeline_mode = #tpu.pipeline_mode<synchronous>, transform_indices = @transform_4, window_bounds = array<i64: 4, 15, 8>}, {transform_indices = @transform_5, window_bounds = array<i64: 1, 8, 32>}, {transform_indices = @transform_6, window_bounds = array<i64: 4, 1, 8, 8>}]} {
    %c0 = arith.constant 0 : index
    %c0_0 = arith.constant 0 : index
    %c0_1 = arith.constant 0 : index
    %c0_2 = arith.constant 0 : index
    %0 = vector.load %arg2[%c0, %c0_0, %c0_1, %c0_2] : memref<4x1x8x8xf32, #tpu.memory_space<vmem>>, vector<4x1x8x8xf32>
    %1 = vector.shape_cast %0 : vector<4x1x8x8xf32> to vector<4x8x8xf32>
    %cst = arith.constant 0.353553385 : f32
    %2 = vector.broadcast %cst : f32 to vector<4x8x8xf32>
    %3 = arith.mulf %1, %2 : vector<4x8x8xf32>
    %c0_3 = arith.constant 0 : index
    %c0_4 = arith.constant 0 : index
    %c0_5 = arith.constant 0 : index
    %c0_6 = arith.constant 0 : index
    %4 = vector.load %arg3[%c0_3, %c0_4, %c0_5, %c0_6] : memref<4x1x8x8xf32, #tpu.memory_space<vmem>>, vector<4x1x8x8xf32>
    %5 = vector.shape_cast %4 : vector<4x1x8x8xf32> to vector<4x8x8xf32>
    "tpu.trace_start"() <{level = 10 : i32, message = "hqd,hdk->hqk"}> : () -> ()
    %cst_7 = arith.constant dense<0.000000e+00> : vector<4x8x8xf32>
    %6 = tpu.matmul %3, %5, %cst_7 {dimension_numbers = #tpu.dot_dimension_numbers<[2], [1], [1], [2], [0, 0, 0, 1, 1, 2], [0], [0]>} : vector<4x8x8xf32>, vector<4x8x8xf32>, vector<4x8x8xf32> -> vector<4x8x8xf32>
    "tpu.trace_stop"() : () -> ()
    %c0_i32 = arith.constant 0 : i32
    %7 = arith.subi %c0_i32, %arg1 : i32
    %c8_i32 = arith.constant 8 : i32
    %8 = arith.muli %7, %c8_i32 : i32
    %9 = tpu.assume_multiple %8, 8 : i32
    %c0_8 = arith.constant 0 : index
    %10 = arith.index_cast %9 : i32 to index
    %c0_9 = arith.constant 0 : index
    %11 = vector.load %arg6[%c0_8, %10, %c0_9] : memref<4x15x8xf32, #tpu.memory_space<vmem>>, vector<4x15x8xf32>
    %c0_10 = arith.constant 0 : index
    %c0_11 = arith.constant 0 : index
    %c0_12 = arith.constant 0 : index
    %c0_13 = arith.constant 0 : index
    %12 = vector.load %arg5[%c0_10, %c0_11, %c0_12, %c0_13] : memref<4x1x8x8xf32, #tpu.memory_space<vmem>>, vector<4x1x8x8xf32>
    %13 = vector.shape_cast %12 : vector<4x1x8x8xf32> to vector<4x8x8xf32>
    "tpu.trace_start"() <{level = 10 : i32, message = "hqd,hwd->hqw"}> : () -> ()
    %cst_14 = arith.constant dense<0.000000e+00> : vector<4x8x15xf32>
    %14 = tpu.matmul %13, %11, %cst_14 {dimension_numbers = #tpu.dot_dimension_numbers<[2], [2], [1], [1], [0, 0, 0, 1, 1, 1], [0], [0]>} : vector<4x8x8xf32>, vector<4x15x8xf32>, vector<4x8x15xf32> -> vector<4x8x15xf32>
    "tpu.trace_stop"() : () -> ()
    %15 = tpu.iota {dimensions = array<i32: 1>} : vector<1x8x1xi32>
    %c7_i32 = arith.constant 7 : i32
    %16 = vector.broadcast %c7_i32 : i32 to vector<1x8x1xi32>
    %17 = arith.subi %16, %15 : vector<1x8x1xi32>
    %cst_15 = arith.constant 0.000000e+00 : f32
    %18 = vector.broadcast %cst_15 : f32 to vector<4x8x1xf32>
    %19 = vector.extract_strided_slice %14 {offsets = [0, 0, 1], sizes = [4, 8, 14], strides = [1, 1, 1]} : vector<4x8x15xf32> to vector<4x8x14xf32>
    %20 = tpu.concatenate %19, %18 in 2 : vector<4x8x14xf32>, vector<4x8x1xf32> -> vector<4x8x15xf32>
    %c1_i32 = arith.constant 1 : i32
    %21 = vector.broadcast %c1_i32 : i32 to vector<1x8x1xi32>
    %22 = arith.andi %17, %21 : vector<1x8x1xi32>
    %c0_i32_16 = arith.constant 0 : i32
    %23 = vector.broadcast %c0_i32_16 : i32 to vector<1x8x1xi32>
    %24 = arith.cmpi ne, %22, %23 : vector<1x8x1xi32>
    %25 = vector.shape_cast %24 : vector<1x8x1xi1> to vector<1x8x1xi1>
    %26 = vector.broadcast %25 : vector<1x8x1xi1> to vector<4x8x15xi1>
    %27 = arith.select %26, %20, %14 : vector<4x8x15xi1>, vector<4x8x15xf32>
    %cst_17 = arith.constant 0.000000e+00 : f32
    %28 = vector.broadcast %cst_17 : f32 to vector<4x8x2xf32>
    %29 = vector.extract_strided_slice %27 {offsets = [0, 0, 2], sizes = [4, 8, 13], strides = [1, 1, 1]} : vector<4x8x15xf32> to vector<4x8x13xf32>
    %30 = tpu.concatenate %29, %28 in 2 : vector<4x8x13xf32>, vector<4x8x2xf32> -> vector<4x8x15xf32>
    %c2_i32 = arith.constant 2 : i32
    %31 = vector.broadcast %c2_i32 : i32 to vector<1x8x1xi32>
    %32 = arith.andi %17, %31 : vector<1x8x1xi32>
    %c0_i32_18 = arith.constant 0 : i32
    %33 = vector.broadcast %c0_i32_18 : i32 to vector<1x8x1xi32>
    %34 = arith.cmpi ne, %32, %33 : vector<1x8x1xi32>
    %35 = vector.shape_cast %34 : vector<1x8x1xi1> to vector<1x8x1xi1>
    %36 = vector.broadcast %35 : vector<1x8x1xi1> to vector<4x8x15xi1>
    %37 = arith.select %36, %30, %27 : vector<4x8x15xi1>, vector<4x8x15xf32>
    %cst_19 = arith.constant 0.000000e+00 : f32
    %38 = vector.broadcast %cst_19 : f32 to vector<4x8x4xf32>
    %39 = vector.extract_strided_slice %37 {offsets = [0, 0, 4], sizes = [4, 8, 11], strides = [1, 1, 1]} : vector<4x8x15xf32> to vector<4x8x11xf32>
    %40 = tpu.concatenate %39, %38 in 2 : vector<4x8x11xf32>, vector<4x8x4xf32> -> vector<4x8x15xf32>
    %c4_i32 = arith.constant 4 : i32
    %41 = vector.broadcast %c4_i32 : i32 to vector<1x8x1xi32>
    %42 = arith.andi %17, %41 : vector<1x8x1xi32>
    %c0_i32_20 = arith.constant 0 : i32
    %43 = vector.broadcast %c0_i32_20 : i32 to vector<1x8x1xi32>
    %44 = arith.cmpi ne, %42, %43 : vector<1x8x1xi32>
    %45 = vector.shape_cast %44 : vector<1x8x1xi1> to vector<1x8x1xi1>
    %46 = vector.broadcast %45 : vector<1x8x1xi1> to vector<4x8x15xi1>
    %47 = arith.select %46, %40, %37 : vector<4x8x15xi1>, vector<4x8x15xf32>
    %48 = vector.extract_strided_slice %47 {offsets = [0, 0, 0], sizes = [4, 8, 8], strides = [1, 1, 1]} : vector<4x8x15xf32> to vector<4x8x8xf32>
    %49 = arith.addf %6, %48 : vector<4x8x8xf32>
    %cst_21 = arith.constant dense<0xFF800000> : vector<4x8xf32>
    %50 = vector.multi_reduction <maximumf>, %49, %cst_21 [2] : vector<4x8x8xf32> to vector<4x8xf32>
    %51 = vector.shape_cast %50 : vector<4x8xf32> to vector<4x8x1xf32>
    %52 = vector.broadcast %51 : vector<4x8x1xf32> to vector<4x8x8xf32>
    %53 = arith.subf %49, %52 : vector<4x8x8xf32>
    %54 = math.exp %53 : vector<4x8x8xf32>
    %cst_22 = arith.constant dense<0.000000e+00> : vector<4x8xf32>
    %55 = vector.multi_reduction <add>, %54, %cst_22 [2] : vector<4x8x8xf32> to vector<4x8xf32>
    %56 = vector.shape_cast %55 : vector<4x8xf32> to vector<4x8x1xf32>
    %c0_23 = arith.constant 0 : index
    %c0_24 = arith.constant 0 : index
    %c0_25 = arith.constant 0 : index
    %c0_26 = arith.constant 0 : index
    %57 = vector.load %arg4[%c0_23, %c0_24, %c0_25, %c0_26] : memref<4x1x8x8xf32, #tpu.memory_space<vmem>>, vector<4x1x8x8xf32>
    %58 = vector.shape_cast %57 : vector<4x1x8x8xf32> to vector<4x8x8xf32>
    %59 = vector.broadcast %56 : vector<4x8x1xf32> to vector<4x8x8xf32>
    %60 = arith.divf %54, %59 : vector<4x8x8xf32>
    "tpu.trace_start"() <{level = 10 : i32, message = "hqk,hkd->hqd"}> : () -> ()
    %cst_27 = arith.constant dense<0.000000e+00> : vector<4x8x8xf32>
    %61 = tpu.matmul %60, %58, %cst_27 {dimension_numbers = #tpu.dot_dimension_numbers<[2], [1], [1], [2], [0, 0, 0, 1, 1, 2], [0], [0]>} : vector<4x8x8xf32>, vector<4x8x8xf32>, vector<4x8x8xf32> -> vector<4x8x8xf32>
    "tpu.trace_stop"() : () -> ()
    %c0_28 = arith.constant 0 : index
    %c0_29 = arith.constant 0 : index
    %c0_30 = arith.constant 0 : index
    %c0_31 = arith.constant 0 : index
    %62 = vector.load %arg8[%c0_28, %c0_29, %c0_30, %c0_31] : memref<4x1x8x8xf32, #tpu.memory_space<vmem>>, vector<4x1x8x8xf32>
    %63 = vector.shape_cast %62 : vector<4x1x8x8xf32> to vector<4x8x8xf32>
    %64 = vector.shape_cast %60 : vector<4x8x8xf32> to vector<4x1x8x8xf32>
    tpu.vector_store %arg8[%c0_28, %c0_29, %c0_30, %c0_31], %64 {strides = array<i32>} : memref<4x1x8x8xf32, #tpu.memory_space<vmem>>, vector<4x1x8x8xf32>,
    %65 = vector.extract_strided_slice %61 {offsets = [0, 0, 0], sizes = [1, 8, 8], strides = [1, 1, 1]} : vector<4x8x8xf32> to vector<1x8x8xf32>
    %66 = vector.shape_cast %65 : vector<1x8x8xf32> to vector<8x8xf32>
    %67 = vector.extract_strided_slice %61 {offsets = [1, 0, 0], sizes = [1, 8, 8], strides = [1, 1, 1]} : vector<4x8x8xf32> to vector<1x8x8xf32>
    %68 = vector.shape_cast %67 : vector<1x8x8xf32> to vector<8x8xf32>
    %69 = vector.extract_strided_slice %61 {offsets = [2, 0, 0], sizes = [1, 8, 8], strides = [1, 1, 1]} : vector<4x8x8xf32> to vector<1x8x8xf32>
    %70 = vector.shape_cast %69 : vector<1x8x8xf32> to vector<8x8xf32>
    %71 = vector.extract_strided_slice %61 {offsets = [3, 0, 0], sizes = [1, 8, 8], strides = [1, 1, 1]} : vector<4x8x8xf32> to vector<1x8x8xf32>
    %72 = vector.shape_cast %71 : vector<1x8x8xf32> to vector<8x8xf32>
    %73 = tpu.concatenate %66, %68, %70, %72 in 1 : vector<8x8xf32>, vector<8x8xf32>, vector<8x8xf32>, vector<8x8xf32> -> vector<8x32xf32>
    %c0_32 = arith.constant 0 : index
    %c0_33 = arith.constant 0 : index
    %c0_34 = arith.constant 0 : index
    %74 = vector.load %arg7[%c0_32, %c0_33, %c0_34] : memref<1x8x32xf32, #tpu.memory_space<vmem>>, vector<1x8x32xf32>
    %75 = vector.shape_cast %74 : vector<1x8x32xf32> to vector<8x32xf32>
    %76 = vector.shape_cast %73 : vector<8x32xf32> to vector<1x8x32xf32>
    tpu.vector_store %arg7[%c0_32, %c0_33, %c0_34], %76 {strides = array<i32>} : memref<1x8x32xf32, #tpu.memory_space<vmem>>, vector<1x8x32xf32>,
    return
  }
  func.func @transform_0(%arg0: i32, %arg1: i32) -> (i32, i32, i32, i32) {
    %c0_i32 = arith.constant 0 : i32
    %c0_i32_0 = arith.constant 0 : i32
    %c0_i32_1 = arith.constant 0 : i32
    return %c0_i32, %arg0, %arg1, %c0_i32_0 : i32, i32, i32, i32
  }
  func.func @transform_1(%arg0: i32, %arg1: i32) -> (i32, i32, i32, i32) {
    %c0_i32 = arith.constant 0 : i32
    %c0_i32_0 = arith.constant 0 : i32
    %c0_i32_1 = arith.constant 0 : i32
    %c0_i32_2 = arith.constant 0 : i32
    return %c0_i32, %arg0, %c0_i32_0, %c0_i32_1 : i32, i32, i32, i32
  }
  func.func @transform_2(%arg0: i32, %arg1: i32) -> (i32, i32, i32, i32) {
    %c0_i32 = arith.constant 0 : i32
    %c0_i32_0 = arith.constant 0 : i32
    %c0_i32_1 = arith.constant 0 : i32
    %c0_i32_2 = arith.constant 0 : i32
    return %c0_i32, %arg0, %c0_i32_0, %c0_i32_1 : i32, i32, i32, i32
  }
  func.func @transform_3(%arg0: i32, %arg1: i32) -> (i32, i32, i32, i32) {
    %c0_i32 = arith.constant 0 : i32
    %c0_i32_0 = arith.constant 0 : i32
    %c0_i32_1 = arith.constant 0 : i32
    return %c0_i32, %arg0, %arg1, %c0_i32_0 : i32, i32, i32, i32
  }
  func.func @transform_4(%arg0: i32, %arg1: i32) -> (i32, i32, i32) {
    %c0_i32 = arith.constant 0 : i32
    %c0_i32_0 = arith.constant 0 : i32
    %c0_i32_1 = arith.constant 0 : i32
    %c0_i32_2 = arith.constant 0 : i32
    return %c0_i32, %c0_i32_0, %c0_i32_1 : i32, i32, i32
  }
  func.func @transform_5(%arg0: i32, %arg1: i32) -> (i32, i32, i32) {
    %c0_i32 = arith.constant 0 : i32
    %c0_i32_0 = arith.constant 0 : i32
    return %arg0, %arg1, %c0_i32 : i32, i32, i32
  }
  func.func @transform_6(%arg0: i32, %arg1: i32) -> (i32, i32, i32, i32) {
    %c0_i32 = arith.constant 0 : i32
    %c0_i32_0 = arith.constant 0 : i32
    %c0_i32_1 = arith.constant 0 : i32
    return %c0_i32, %arg0, %arg1, %c0_i32_0 : i32, i32, i32, i32
  }
}

module attributes {stable_mosaic.version = 11 : i64} {
  func.func @_fc_res_ln_kernel(%arg0: i32, %arg1: memref<16x32xf32, #tpu.memory_space<vmem>>, %arg2: memref<32x32xf32, #tpu.memory_space<vmem>>, %arg3: memref<16x32xf32, #tpu.memory_space<vmem>>, %arg4: memref<1x32xf32, #tpu.memory_space<vmem>>, %arg5: memref<1x32xf32, #tpu.memory_space<vmem>>, %arg6: memref<16x32xf32, #tpu.memory_space<vmem>>) attributes {dimension_semantics = [#tpu.dimension_semantics<parallel>], iteration_bounds = array<i64: 1>, scalar_prefetch = 0 : i64, scratch_operands = 0 : i64, tpu.core_type = #tpu.core_type<tc>, window_params = [{transform_indices = @transform_0, window_bounds = array<i64: 16, 32>}, {pipeline_mode = #tpu.pipeline_mode<synchronous>, transform_indices = @transform_1, window_bounds = array<i64: 32, 32>}, {transform_indices = @transform_2, window_bounds = array<i64: 16, 32>}, {pipeline_mode = #tpu.pipeline_mode<synchronous>, transform_indices = @transform_3, window_bounds = array<i64: 1, 32>}, {pipeline_mode = #tpu.pipeline_mode<synchronous>, transform_indices = @transform_4, window_bounds = array<i64: 1, 32>}, {transform_indices = @transform_5, window_bounds = array<i64: 16, 32>}]} {
    %c0 = arith.constant 0 : index
    %c0_0 = arith.constant 0 : index
    %0 = vector.load %arg3[%c0, %c0_0] : memref<16x32xf32, #tpu.memory_space<vmem>>, vector<16x32xf32>
    %c0_1 = arith.constant 0 : index
    %c0_2 = arith.constant 0 : index
    %1 = vector.load %arg1[%c0_1, %c0_2] : memref<16x32xf32, #tpu.memory_space<vmem>>, vector<16x32xf32>
    %c0_3 = arith.constant 0 : index
    %c0_4 = arith.constant 0 : index
    %2 = vector.load %arg2[%c0_3, %c0_4] : memref<32x32xf32, #tpu.memory_space<vmem>>, vector<32x32xf32>
    %cst = arith.constant dense<0.000000e+00> : vector<16x32xf32>
    %3 = tpu.matmul %1, %2, %cst {dimension_numbers = #tpu.dot_dimension_numbers<[1], [0], [0], [1], [0, 0, 1, 1], [], []>} : vector<16x32xf32>, vector<32x32xf32>, vector<16x32xf32> -> vector<16x32xf32>
    %4 = arith.addf %0, %3 : vector<16x32xf32>
    %cst_5 = arith.constant dense<0.000000e+00> : vector<16xf32>
    %5 = vector.multi_reduction <add>, %4, %cst_5 [1] : vector<16x32xf32> to vector<16xf32>
    %6 = vector.shape_cast %5 : vector<16xf32> to vector<16x1xf32>
    %cst_6 = arith.constant 3.200000e+01 : f32
    %7 = vector.broadcast %cst_6 : f32 to vector<16x1xf32>
    %8 = arith.divf %6, %7 : vector<16x1xf32>
    %9 = vector.broadcast %8 : vector<16x1xf32> to vector<16x32xf32>
    %10 = arith.subf %4, %9 : vector<16x32xf32>
    %11 = arith.mulf %10, %10 : vector<16x32xf32>
    %cst_7 = arith.constant dense<0.000000e+00> : vector<16xf32>
    %12 = vector.multi_reduction <add>, %11, %cst_7 [1] : vector<16x32xf32> to vector<16xf32>
    %13 = vector.shape_cast %12 : vector<16xf32> to vector<16x1xf32>
    %cst_8 = arith.constant 3.200000e+01 : f32
    %14 = vector.broadcast %cst_8 : f32 to vector<16x1xf32>
    %15 = arith.divf %13, %14 : vector<16x1xf32>
    %16 = vector.broadcast %8 : vector<16x1xf32> to vector<16x32xf32>
    %17 = arith.subf %4, %16 : vector<16x32xf32>
    %cst_9 = arith.constant 9.99999974E-6 : f32
    %18 = vector.broadcast %cst_9 : f32 to vector<16x1xf32>
    %19 = arith.addf %15, %18 : vector<16x1xf32>
    %20 = math.rsqrt %19 : vector<16x1xf32>
    %21 = vector.broadcast %20 : vector<16x1xf32> to vector<16x32xf32>
    %22 = arith.mulf %17, %21 : vector<16x32xf32>
    %c0_10 = arith.constant 0 : index
    %c0_11 = arith.constant 0 : index
    %23 = vector.load %arg4[%c0_10, %c0_11] : memref<1x32xf32, #tpu.memory_space<vmem>>, vector<1x32xf32>
    %24 = vector.broadcast %23 : vector<1x32xf32> to vector<16x32xf32>
    %25 = arith.mulf %22, %24 : vector<16x32xf32>
    %c0_12 = arith.constant 0 : index
    %c0_13 = arith.constant 0 : index
    %26 = vector.load %arg5[%c0_12, %c0_13] : memref<1x32xf32, #tpu.memory_space<vmem>>, vector<1x32xf32>
    %27 = vector.broadcast %26 : vector<1x32xf32> to vector<16x32xf32>
    %28 = arith.addf %25, %27 : vector<16x32xf32>
    %c0_14 = arith.constant 0 : index
    %c0_15 = arith.constant 0 : index
    %29 = vector.load %arg6[%c0_14, %c0_15] : memref<16x32xf32, #tpu.memory_space<vmem>>, vector<16x32xf32>
    tpu.vector_store %arg6[%c0_14, %c0_15], %28 {strides = array<i32>} : memref<16x32xf32, #tpu.memory_space<vmem>>, vector<16x32xf32>,
    return
  }
  func.func @transform_0(%arg0: i32) -> (i32, i32) {
    %c0_i32 = arith.constant 0 : i32
    %c0_i32_0 = arith.constant 0 : i32
    return %arg0, %c0_i32 : i32, i32
  }
  func.func @transform_1(%arg0: i32) -> (i32, i32) {
    %c0_i32 = arith.constant 0 : i32
    %c0_i32_0 = arith.constant 0 : i32
    %c0_i32_1 = arith.constant 0 : i32
    return %c0_i32, %c0_i32_0 : i32, i32
  }
  func.func @transform_2(%arg0: i32) -> (i32, i32) {
    %c0_i32 = arith.constant 0 : i32
    %c0_i32_0 = arith.constant 0 : i32
    return %arg0, %c0_i32 : i32, i32
  }
  func.func @transform_3(%arg0: i32) -> (i32, i32) {
    %c0_i32 = arith.constant 0 : i32
    %c0_i32_0 = arith.constant 0 : i32
    %c0_i32_1 = arith.constant 0 : i32
    return %c0_i32, %c0_i32_0 : i32, i32
  }
  func.func @transform_4(%arg0: i32) -> (i32, i32) {
    %c0_i32 = arith.constant 0 : i32
    %c0_i32_0 = arith.constant 0 : i32
    %c0_i32_1 = arith.constant 0 : i32
    return %c0_i32, %c0_i32_0 : i32, i32
  }
  func.func @transform_5(%arg0: i32) -> (i32, i32) {
    %c0_i32 = arith.constant 0 : i32
    %c0_i32_0 = arith.constant 0 : i32
    return %arg0, %c0_i32 : i32, i32
  }
}

</mosaic_0001>

<bundles_post_ra>
// kernel: _lambda_.3
= control target key start
LH: loop header
LB: loop body
LE: loop exit
PB: predicated region body
PF: predicated region fallthrough
CT: control target
= control target key end

     0   :  { %s263_s0 = inlined_call_operand.vmem [shape: f32[16,32], index: 0, kind: input, shape index: {}]   ;;  %s264_s1 = inlined_call_operand.vmem [shape: f32[32,32], index: 1, kind: input, shape index: {}]   ;;  %s265_s2 = inlined_call_operand.vmem [shape: f32[16,32], index: 2, kind: input, shape index: {}]   ;;  %s266_s3 = inlined_call_operand.vmem [shape: f32[1,32], index: 3, kind: input, shape index: {}]   ;;  %s267_s4 = inlined_call_operand.vmem [shape: f32[1,32], index: 4, kind: input, shape index: {}]   ;;  %s268_s5 = inlined_call_operand.hbm [shape: f32[16,32], index: 5, kind: output, shape index: {}]  }
   0x1   :  { %v28_v0 = vld [vmem:[%s264_s1 + $0x18] sm:$0xff]  ;;  %v27_v1 = vld [vmem:[%s264_s1 + $0x10] sm:$0xff]  ;;  %v26_v2 = vld [vmem:[%s264_s1 + $0x8] sm:$0xff] }
   0x2   :  { %48 = vmatpush.msra.mxu0 %v28_v0  ;;  %146 = vmatpush.msra.mxu1 %v28_v0 }
   0x3   :  { %10 = vsyncpa [#allocation3], 0  ;;  %v25_v3 = vld [vmem:[%s264_s1] sm:$0xff]  ;;  %vm29_vm0 = vcmask 261120   ;;  %v24_v5 = vld [vmem:[%s263_s0 + $0x8] sm:$0xff]  ;;  %v188_v14 = vmov 32.0  }
   0x4   :  { %49 = vmatpush.msra.mxu0 %v27_v1  ;;  %147 = vmatpush.msra.mxu1 %v27_v1  ;;  %v23_v4 = vld [vmem:[%s263_s0] sm:$0xff]  ;;  %v22_v9 = vld [vmem:[%s265_s2 + $0x8] sm:$0xff]  ;;  %156 = vrcp.f32 %v188_v14  ;;  %s132_s13 = sshll.u32 %s268_s5, 4  ;;  %s191_s14 = smov 8   ;;  %s133_s13 = int_to_ptr.hbm [resolvable:$true] %s132_s13 }
   0x5   :  { %v21_v6 = vld [vmem:[%s265_s2] sm:$0xff] }
   0x6   :  { %50 = vmatpush.msra.mxu0 %v26_v2  ;;  %148 = vmatpush.msra.mxu1 %v26_v2  ;;  %v154_v45 = vld [vmem:[%s266_s3] ss:$0 sm:$0xff]  ;;  %s189_s3 = smov [#allocation2]  }
   0x7   :  { %v155_v49 = vld [vmem:[%s267_s4] ss:$0 sm:$0xff]  ;;  %s130_s10 = sshll.u32 %s189_s3, 4  ;;  %s190_s4 = smov 128   ;;  %s131_s10 = int_to_ptr.vmem [resolvable:$true] %s130_s10 }
   0x8   :  { %51 = vmatpush.msra.mxu0 %v25_v3  ;;  %149 = vmatpush.msra.mxu1 %v25_v3 }
   0x9   :  { %144 = vmatmul.msk.f32.vlgmr.msra.gmra.mxu0 %vm29_vm0, %v23_v4  ;;  %145 = vmatmul.msk.f32.vlgmr.msra.gmra.mxu1 %vm29_vm0, %v24_v5 }
   0xa   :  { %v157_v15 = vpop.eup %156 }
   0xb   :  { %v68_v16 = vmul.f32 32.0, %v157_v15  ;;  %vm72_vm1 = vweird.f32 %v157_v15 }
   0xd   :  { %v69_v17 = vsub.f32 1.0, %v68_v16 }
   0xf   :  { %v70_v18 = vmul.f32 %v157_v15, %v69_v17 }
  0x11   :  { %v71_v19 = vadd.f32 %v157_v15, %v70_v18 }
  0x13   :  { %v73_v20 = vsel %vm72_vm1, %v157_v15, %v71_v19 }
  0x86   :  { %v53_v7 = vpop.f32.mrf.mxu0  ;;  %v56_v10 = vpop.f32.mrf.mxu1 }
  0x87   :  { %v59_v8 = vadd.f32 %v53_v7, %v21_v6  ;;  %v60_v12 = vadd.f32 %v56_v10, %v22_v9 }
  0x89   :  { %v61_v11 = vsel %vm29_vm0, %v59_v8, 0.0  ;;  %v64_v13 = vsel %vm29_vm0, %v60_v12, 0.0 }
  0x8a   :  { %62 = vadd.xlane.f32.xlu0 %v61_v11 }
  0x92   :  { %65 = vadd.xlane.f32.xlu0 %v64_v13 }
  0xfd   :  { %v63_v21 = vpop.xlane.xlu0 %62 }
  0xfe   :  { %v74_v22 = vmul.f32 %v73_v20, %v63_v21 }
 0x100   :  { %v76_v23 = vsub.f32 %v59_v8, %v74_v22 }
 0x102   :  { %v78_v24 = vmul.f32 %v76_v23, %v76_v23 }
 0x104   :  { %v80_v25 = vsel %vm29_vm0, %v78_v24, 0.0 }
 0x105   :  { %81 = vadd.xlane.f32.xlu1 %v80_v25  ;;  %v66_v26 = vpop.xlane.xlu0 %65 }
 0x106   :  { %v75_v27 = vmul.f32 %v73_v20, %v66_v26 }
 0x108   :  { %v77_v28 = vsub.f32 %v60_v12, %v75_v27 }
 0x10a   :  { %v79_v29 = vmul.f32 %v77_v28, %v77_v28 }
 0x10c   :  { %v83_v30 = vsel %vm29_vm0, %v79_v29, 0.0 }
 0x10d   :  { %84 = vadd.xlane.f32.xlu1 %v83_v30 }
 0x178   :  { %v82_v31 = vpop.xlane.xlu1 %81 }
 0x179   :  { %v86_v32 = vmul.f32 %v82_v31, %v73_v20 }
 0x17b   :  { %v88_v33 = vadd.f32 1e-05, %v86_v32 }
 0x17d   :  { %158 = vrsqrt.f32 %v88_v33  ;;  %vm96_vm3 = vweird.f32 %v88_v33 }
 0x180   :  { %v85_v34 = vpop.xlane.xlu1 %84 }
 0x181   :  { %v87_v35 = vmul.f32 %v85_v34, %v73_v20 }
 0x183   :  { %v159_v36 = vpop.eup %158  ;;  %v89_v37 = vadd.f32 1e-05, %v87_v35 }
 0x184   :  { %v91_v38 = vmul.f32 %v159_v36, %v88_v33  ;;  %vm97_vm2 = vweird.f32 %v159_v36 }
 0x185   :  { %160 = vrsqrt.f32 %v89_v37  ;;  %vm98_vm4 = vmor %vm96_vm3, %vm97_vm2  ;;  %vm106_vm6 = vweird.f32 %v89_v37 }
 0x186   :  { %v92_v39 = vmul.f32 %v159_v36, %v91_v38 }
 0x188   :  { %v93_v40 = vmul.f32 0.5, %v92_v39 }
 0x18a   :  { %v94_v41 = vsub.f32 1.5, %v93_v40 }
 0x18b   :  { %v161_v42 = vpop.eup %160 }
 0x18c   :  { %v95_v43 = vmul.f32 %v159_v36, %v94_v41  ;;  %v101_v44 = vmul.f32 %v161_v42, %v89_v37  ;;  %vm107_vm5 = vweird.f32 %v161_v42 }
 0x18d   :  { %vm108_vm7 = vmor %vm106_vm6, %vm107_vm5 }
 0x18e   :  { %v99_v46 = vsel %vm98_vm4, %v159_v36, %v95_v43  ;;  %v102_v47 = vmul.f32 %v161_v42, %v101_v44 }
 0x18f   :  { %v110_v48 = vmul.f32 %v99_v46, %v76_v23 }
 0x190   :  { %v103_v50 = vmul.f32 0.5, %v102_v47 }
 0x191   :  { %v116_v51 = vmul.f32 %v154_v45, %v110_v48 }
 0x192   :  { %v104_v52 = vsub.f32 1.5, %v103_v50 }
 0x193   :  { %v122_v53 = vadd.f32 %v155_v49, %v116_v51 }
 0x194   :  { %v105_v54 = vmul.f32 %v161_v42, %v104_v52 }
 0x195   :  { %124 = vst.msk [vmem:[#allocation2] sm:$0xff] %vm29_vm0, %v122_v53 }
 0x196   :  { %v109_v55 = vsel %vm108_vm7, %v161_v42, %v105_v54 }
 0x197   :  { %v111_v56 = vmul.f32 %v109_v55, %v77_v28 }
 0x199   :  { %v117_v57 = vmul.f32 %v154_v45, %v111_v56 }
 0x19b   :  { %v123_v58 = vadd.f32 %v155_v49, %v117_v57 }
 0x19d   :  { %125 = vst.msk [vmem:[#allocation2 + $0x8] sm:$0xff] %vm29_vm0, %v123_v58 }
 0x19e   :  { %138 = dma.vmem_to_hbm [thread:$0]  %s131_s10, 256, %s133_s13, [#allocation3], %s190_s4, %s190_s4, %s191_s14  }
 0x19f   :  { %186 = dma.done.wait [#allocation3], 256  }
 0x1a0   :  { %187 = vsyncadd [#allocation3], 4294967040 }
 0x1a1   :  { %143 = vsyncpa [#allocation3], 1 }

// kernel: _lambda_.2
= control target key start
LH: loop header
LB: loop body
LE: loop exit
PB: predicated region body
PF: predicated region fallthrough
CT: control target
= control target key end

     0   :  { %s1815_s0 = inlined_call_operand.vmem [shape: f32[4,2,8,8], index: 0, kind: input, shape index: {}]   ;;  %s1816_s1 = inlined_call_operand.vmem [shape: f32[4,2,8,8], index: 1, kind: input, shape index: {}]   ;;  %s1817_s2 = inlined_call_operand.vmem [shape: f32[4,2,8,8], index: 2, kind: input, shape index: {}]   ;;  %s1818_s3 = inlined_call_operand.vmem [shape: f32[4,2,8,8], index: 3, kind: input, shape index: {}]   ;;  %s1819_s4 = inlined_call_operand.vmem [shape: f32[4,15,8], index: 4, kind: input, shape index: {}]   ;;  %s1820_s5 = inlined_call_operand.vmem [shape: f32[2,8,32], index: 5, kind: output, shape index: {0}]   ;;  %s1821_s6 = inlined_call_operand.hbm [shape: f32[4,2,8,8], index: 6, kind: output, shape index: {1}]  }
   0x1   :  { %1822 = sst [smem:[#allocation9_spill]] %s1815_s0 }
   0x2   :  { %12 = vsyncpa [#allocation7], 0 }
   0x3   :  { %14 = vsyncpa [#allocation7 + $0x1], 0  ;;  %s1515_s21 = smov 0   ;;  %s1517_s22 = smov 0  }
   0x4   :  { %s1519_s23 = smov 0   ;;  %s1521_s24 = smov 0  }
   0x5   :  { %s1523_s25 = smov 0   ;;  %s1525_s26 = smov 0  }
   0x6 LB: > { %s1270_s27 = sadd.s32 4294967295, %s1470_s26   ;;  %s1271_s28 = sadd.s32 4294967294, %s1470_s26   ;;  %s1470_s26 = sphi %s1525_s26, %s20_s26   ;;  %s1466_s25 = sphi %s1523_s25, %s1837_s25   ;;  %s1462_s24 = sphi %s1521_s24, %s1836_s24   ;;  %s1458_s23 = sphi %s1519_s23, %s1835_s23   ;;  %s1454_s22 = sphi %s1517_s22, %s1834_s22   ;;  %s1450_s21 = sphi %s1515_s21, %s1833_s21  }
   0x7   : > { %s32_s29 = sadd.s32 1, %s1466_s25  ;;  %s41_s30 = sadd.s32 1, %s1458_s23 }
   0x8   : > { %p34_p0 = scmp.ge.s32.totalorder %s32_s29, 2  ;;  %p48_p1 = scmp.ne.s32.totalorder %s1458_s23, %s1454_s22 }
   0x9   : > { %p49_p2 = scmp.eq.s32.totalorder %s1470_s26, 0  ;;  %p209_p3 = scmp.eq.s32.totalorder %s1270_s27, 1 }
   0xa   : > { %s1839_s29 = smov (%p34_p0, %s32_s29), 0  ;;  %p214_p6 = scmp.ne.s32.totalorder %s1454_s22, %s1450_s21 }
   0xb   : > { %p1554_p4 = por %p49_p2, %p48_p1  ;;  %p1558_p5 = por %p209_p3, %p48_p1 }
   0xc   : > { %s36_s9 = ssub.s32 %s1466_s25, %s1839_s29  ;;  %p215_p8 = scmp.eq.s32.totalorder %s1271_s28, 1 }
   0xd   : > { %p39_p7 = scmp.eq.s32.totalorder %s36_s9, 0  ;;  %p1273_p10 = scmp.ge.s32.totalorder %s1470_s26, 2 }
   0xe   : > { %p1569_p9 = por %p215_p8, %p214_p6 }
   0xf   : > { %s1567_s10 = scalar_select %p39_p7, %s1458_s23, %s41_s30  }
  0x10   : > { %234 = sbr.rel (%p1273_p10) target bundleno = 59 (0x3b), region = 20 }
  0x15   : > { %237 = sbr.rel (!%p1554_p4) target bundleno = 35 (0x23), region = 24  ;;  %s239_s12 = sand.u32 (%p1554_p4), 1, %s1458_s23  }
  0x16   : > { %s1275_s13 = sshll.u32 (%p1554_p4), %s1466_s25, 3  ;;  %s1274_s14 = sshll.u32 (%p1554_p4), %s239_s12, 5 }
  0x17   : > { %s1826_s0 = sld [smem:[#allocation9_spill]] (%p1554_p4)  ;;  %s241_s18 = scalar_lea.vmem (%p1554_p4), [#allocation2], %s1274_s14 }
  0x1d   : > { %s244_s17 = scalar_lea.vmem %s1826_s0, %s1275_s13 }
  0x1e   : > { %v279_v0 = vld [vmem:[%s244_s17] sm:$0xff]  ;;  %v281_v1 = vld [vmem:[%s244_s17 + $0x10] sm:$0xff] }
  0x1f   : > { %v283_v2 = vld [vmem:[%s244_s17 + $0x20] sm:$0xff]  ;;  %280 = vst [vmem:[%s241_s18] sm:$0xff] %v279_v0  ;;  %v285_v3 = vld [vmem:[%s244_s17 + $0x30] sm:$0xff] }
  0x20   : > { %282 = vst [vmem:[%s241_s18 + $0x8] sm:$0xff] %v281_v1 }
  0x21   : > { %284 = vst [vmem:[%s241_s18 + $0x10] sm:$0xff] %v283_v2 }
  0x22   : > { %286 = vst [vmem:[%s241_s18 + $0x18] sm:$0xff] %v285_v3 }
  0x23 PF: > { %292 = sbr.rel (!%p1554_p4) target bundleno = 43 (0x2b), region = 62  ;;  %s294_s19 = sand.u32 (%p1554_p4), 1, %s1458_s23  }
  0x24   : > { %s1277_s20 = sshll.u32 (%p1554_p4), %s1466_s25, 3  ;;  %s1276_s27 = sshll.u32 (%p1554_p4), %s294_s19, 5 }
  0x25   : > { %s298_s9 = scalar_lea.vmem (%p1554_p4), %s1816_s1, %s1277_s20  ;;  %s296_s12 = scalar_lea.vmem (%p1554_p4), [#allocation3], %s1276_s27 }
  0x26   : > { %v333_v4 = vld [vmem:[%s298_s9] sm:$0xff] (%p1554_p4)  ;;  %v335_v5 = vld [vmem:[%s298_s9 + $0x10] sm:$0xff] (%p1554_p4) }
  0x27   : > { %v337_v6 = vld [vmem:[%s298_s9 + $0x20] sm:$0xff] (%p1554_p4)  ;;  %334 = vst [vmem:[%s296_s12] sm:$0xff] (%p1554_p4), %v333_v4  ;;  %v339_v7 = vld [vmem:[%s298_s9 + $0x30] sm:$0xff] (%p1554_p4) }
  0x28   : > { %336 = vst [vmem:[%s296_s12 + $0x8] sm:$0xff] %v335_v5 }
  0x29   : > { %338 = vst [vmem:[%s296_s12 + $0x10] sm:$0xff] %v337_v6 }
  0x2a   : > { %340 = vst [vmem:[%s296_s12 + $0x18] sm:$0xff] %v339_v7 }
  0x2b PF: > { %346 = sbr.rel (!%p1554_p4) target bundleno = 51 (0x33), region = 100  ;;  %s348_s13 = sand.u32 (%p1554_p4), 1, %s1458_s23  }
  0x2c   : > { %s1279_s14 = sshll.u32 (%p1554_p4), %s1466_s25, 3  ;;  %s1278_s15 = sshll.u32 (%p1554_p4), %s348_s13, 5 }
  0x2d   : > { %s352_s18 = scalar_lea.vmem (%p1554_p4), %s1817_s2, %s1279_s14  ;;  %s350_s19 = scalar_lea.vmem (%p1554_p4), [#allocation4], %s1278_s15 }
  0x2e   : > { %v387_v8 = vld [vmem:[%s352_s18] sm:$0xff] (%p1554_p4)  ;;  %v389_v9 = vld [vmem:[%s352_s18 + $0x10] sm:$0xff] (%p1554_p4) }
  0x2f   : > { %v391_v10 = vld [vmem:[%s352_s18 + $0x20] sm:$0xff] (%p1554_p4)  ;;  %388 = vst [vmem:[%s350_s19] sm:$0xff] (%p1554_p4), %v387_v8  ;;  %v393_v11 = vld [vmem:[%s352_s18 + $0x30] sm:$0xff] (%p1554_p4) }
  0x30   : > { %390 = vst [vmem:[%s350_s19 + $0x8] sm:$0xff] %v389_v9 }
  0x31   : > { %392 = vst [vmem:[%s350_s19 + $0x10] sm:$0xff] %v391_v10 }
  0x32   : > { %394 = vst [vmem:[%s350_s19 + $0x18] sm:$0xff] %v393_v11 }
  0x33 PF: > { %400 = sbr.rel (!%p1554_p4) target bundleno = 59 (0x3b), region = 138  ;;  %s402_s20 = sand.u32 (%p1554_p4), 1, %s1458_s23  }
  0x34   : > { %s1281_s27 = sshll.u32 (%p1554_p4), %s1466_s25, 3  ;;  %s1280_s28 = sshll.u32 (%p1554_p4), %s402_s20, 5 }
  0x35   : > { %s407_s12 = scalar_lea.vmem (%p1554_p4), %s1818_s3, %s1281_s27  ;;  %s404_s13 = scalar_lea.vmem (%p1554_p4), [#allocation5], %s1280_s28 }
  0x36   : > { %v442_v12 = vld [vmem:[%s407_s12] sm:$0xff] (%p1554_p4)  ;;  %v444_v13 = vld [vmem:[%s407_s12 + $0x10] sm:$0xff] (%p1554_p4) }
  0x37   : > { %v446_v14 = vld [vmem:[%s407_s12 + $0x20] sm:$0xff] (%p1554_p4)  ;;  %443 = vst [vmem:[%s404_s13] sm:$0xff] (%p1554_p4), %v442_v12  ;;  %v448_v15 = vld [vmem:[%s407_s12 + $0x30] sm:$0xff] (%p1554_p4) }
  0x38   : > { %445 = vst [vmem:[%s404_s13 + $0x8] sm:$0xff] %v444_v13 }
  0x39   : > { %447 = vst [vmem:[%s404_s13 + $0x10] sm:$0xff] %v446_v14 }
  0x3a   : > { %449 = vst [vmem:[%s404_s13 + $0x18] sm:$0xff] %v448_v15 }
  0x3b PF: > { %p1282_p11 = scmp.ge.s32.totalorder %s1470_s26, 1  ;;  %p454_p12 = scmp.lt.s32.totalorder %s1470_s26, 3 }
  0x3d   : > { %p455_p13 = pnand %p1282_p11, %p454_p12 }
  0x3e   : > { %s461_s17 = sand.u32 (!%p455_p13), 1, %s1454_s22   ;;  %s1472_s19 = smov (!%p455_p13), 127  }
  0x3f   : > { %458 = sbr.rel (%p455_p13) target bundleno = 1100 (0x44c), region = 176  ;;  %s1626_s9 = sshll.u32 (!%p455_p13), %s461_s17, 5 }
  0x40   : > { %s484_s7 = scalar_lea.vmem (!%p455_p13), [#allocation5], %s1626_s9  ;;  %s1654_s20 = scalar_lea.vmem (!%p455_p13), [#allocation3], %s1626_s9 }
  0x41   : > { %s1658_s27 = scalar_lea.vmem (!%p455_p13), [#allocation2], %s1626_s9  ;;  %s1473_s28 = smov (!%p455_p13), 126  }
  0x42   : > { %s1474_s30 = smov (!%p455_p13), 124   ;;  %s1742_s12 = scalar_lea.vmem (!%p455_p13), [#allocation4], %s1626_s9 }
  0x43   : > { %s1751_s13 = scalar_lea.vmem (!%p455_p13), [#allocation6], %s1626_s9  ;;  %s1475_s9 = smov (!%p455_p13), 24  }
  0x44   : > { %v555_v16 = vld [vmem:[%s1819_s4 + $0x18] sm:$0x7f]  ;;  %vm564_vm0 = vcmask 64512   ;;  %v557_v17 = vld [vmem:[%s1819_s4 + $0x28] sm:$0x7f]  ;;  %v554_v19 = vld [vmem:[%s1819_s4 + $0x10] sm:$0xff]  ;;  %v681_v31 = vlaneseq }
  0x45   : > { %1292 = vmatpush.xpose.msk.msra.mxu1 %vm564_vm0, %v555_v16  ;;  %1295 = vmatpush.xpose.msk.msra.mxu2 %vm564_vm0, %v557_v17  ;;  %v559_v18 = vld [vmem:[%s1819_s4 + $0x38] sm:$0x7f]  ;;  %v556_v20 = vld [vmem:[%s1819_s4 + $0x20] sm:$0xff]  ;;  %v558_v21 = vld [vmem:[%s1819_s4 + $0x30] sm:$0xff]  ;;  %vm700_vm1 = vcmask 113664   ;;  %vm729_vm3 = vcmask 105472  }
  0x46   : > { %1298 = vmatpush.xpose.msk.msra.mxu3 %vm564_vm0, %v559_v18  ;;  %v561_v22 = vld [vmem:[%s484_s7 + $0x8] sm:$0xff]  ;;  %v562_v23 = vld [vmem:[%s484_s7 + $0x10] sm:$0xff]  ;;  %v563_v24 = vld [vmem:[%s484_s7 + $0x18] sm:$0xff]  ;;  %v682_v32 = vshrl.u32 %v681_v31, 7  ;;  %vm758_vm5 = vcmask 89088   ;;  %s1101_s14 = sshll.u32 %s1751_s13, 4  ;;  %s1102_s14 = int_to_ptr.vmem [resolvable:$true] %s1101_s14 }
  0x47   : > { %v553_v25 = vld [vmem:[%s1819_s4 + $0x8] sm:$0x7f]  ;;  %v552_v26 = vld [vmem:[%s1819_s4] sm:$0xff]  ;;  %v548_v34 = vld [vmem:[%s1654_s20 + $0x18] sm:$0xff]  ;;  %s1310_s15 = sshll.u32 %s1462_s24, 3 }
  0x48   : > { %1289 = vmatpush.xpose.msk.msra.mxu0 %vm564_vm0, %v553_v25  ;;  %v560_v27 = vld [vmem:[%s484_s7] sm:$0xff]  ;;  %v1651_v33 = vsub.s32 7, %v682_v32  ;;  %v540_v35 = vld [vmem:[%s1658_s27 + $0x18] sm:$0xff]  ;;  %v539_v49 = vld [vmem:[%s1658_s27 + $0x10] sm:$0xff]  ;;  %s1476_s7 = smov 16  }
  0x49   : > { %1293 = vmatpush.xpose.msk.msra.mxu1 %vm564_vm0, %v554_v19  ;;  %1296 = vmatpush.xpose.msk.msra.mxu2 %vm564_vm0, %v556_v20  ;;  %v544_v36 = vmul.f32 0.35355338, %v540_v35  ;;  %v547_v50 = vld [vmem:[%s1654_s20 + $0x10] sm:$0xff]  ;;  %v543_v51 = vmul.f32 0.35355338, %v539_v49  ;;  %v538_v52 = vld [vmem:[%s1658_s27 + $0x8] sm:$0xff] }
  0x4a   : > { %1299 = vmatpush.xpose.msk.msra.mxu3 %vm564_vm0, %v558_v21  ;;  %v705_v37 = vand.u32 1, %v1651_v33  ;;  %v546_v53 = vld [vmem:[%s1654_s20 + $0x8] sm:$0xff]  ;;  %v542_v54 = vmul.f32 0.35355338, %v538_v52  ;;  %v734_v55 = vand.u32 2, %v1651_v33  ;;  %v537_v5 = vld [vmem:[%s1658_s27] sm:$0xff] }
  0x4b   : > { %v545_v6 = vld [vmem:[%s1654_s20] sm:$0xff]  ;;  %v541_v7 = vmul.f32 0.35355338, %v537_v5  ;;  %v763_v8 = vand.u32 4, %v1651_v33  ;;  %v902_v52 = vld [vmem:[%s1742_s12 + $0x18] sm:$0xff]  ;;  %s1086_s27 = scalar_lea.sflag [#allocation7], %s461_s17 }
  0x4c   : > { %1294 = vmatmul.msk.f32.vlgmr.msra.gmra.mxu1 %vm564_vm0, %v561_v22  ;;  %1297 = vmatmul.msk.f32.vlgmr.msra.gmra.mxu2 %vm564_vm0, %v562_v23  ;;  %vm1663_vm2 = vcmp.ne.s32.totalorder %v705_v37, 0  ;;  %vm1687_vm4 = vcmp.ne.s32.totalorder %v734_v55, 0 }
  0x4d   : > { %1300 = vmatmul.msk.f32.vlgmr.msra.gmra.mxu3 %vm564_vm0, %v563_v24  ;;  %1290 = vmatpush.xpose.msk.msra.mxu0 %vm564_vm0, %v552_v26  ;;  %vm1711_vm6 = vcmp.ne.s32.totalorder %v763_v8, 0 }
  0x4e   : > { %858 = vmatpush.msrb.mxu3 %v548_v34  ;;  %835 = vmatpush.msrb.mxu2 %v547_v50 }
  0x4f   : > { %812 = vmatpush.msrb.mxu1 %v546_v53 }
  0x50   : > { %1291 = vmatmul.msk.f32.vlgmr.msra.gmra.mxu0 %vm564_vm0, %v560_v27  ;;  %1050 = vmatpush.msra.mxu3 %v902_v52 }
  0x51   : > { %789 = vmatpush.msrb.mxu0 %v545_v6  ;;  %v901_v6 = vld [vmem:[%s1742_s12 + $0x10] sm:$0xff] }
  0x52   : > { %1027 = vmatpush.msra.mxu2 %v901_v6 }
  0x54   : > { %1303 = vmatmul.msk.f32.vlgmr.msrb.gmra.mxu2 %vm564_vm0, %v543_v51  ;;  %1302 = vmatmul.msk.f32.vlgmr.msrb.gmra.mxu1 %vm564_vm0, %v542_v54 }
  0x55   : > { %1304 = vmatmul.msk.f32.vlgmr.msrb.gmra.mxu3 %vm564_vm0, %v544_v36 }
  0x58   : > { %1301 = vmatmul.msk.f32.vlgmr.msrb.gmra.mxu0 %vm564_vm0, %v541_v7 }
  0xc9   : > { %v620_v28 = vpop.f32.mrf.mxu1 }
  0xca   : > { %690 = vrot.lane.b32.xlu1 %v620_v28, %s1472_s19 }
  0xcd   : > { %v591_v48 = vpop.f32.mrf.mxu0 }
  0xcf   : > { %v649_v29 = vpop.f32.mrf.mxu2 }
  0xd0   : > { %692 = vrot.lane.b32.xlu0 %v649_v29, %s1472_s19  ;;  %v678_v30 = vpop.f32.mrf.mxu3 }
  0xd5   : > { %v791_v35 = vpop.f32.mrf.mxu0 }
  0xd7   : > { %v837_v20 = vpop.f32.mrf.mxu2 }
  0xd8   : > { %694 = vrot.lane.b32.xlu0 %v678_v30, %s1472_s19  ;;  %v860_v11 = vpop.f32.mrf.mxu3 }
 0x13c   : > { %v691_v39 = vpop.permute.xlu1 %690 }
 0x13d   : > { %v702_v40 = vsel %vm700_vm1, %v691_v39, 0.0 }
 0x13e   : > { %v710_v41 = vsel %vm1663_vm2, %v702_v40, %v620_v28  ;;  %v814_v28 = vpop.f32.mrf.mxu1 }
 0x13f   : > { %719 = vrot.lane.b32.xlu0 %v710_v41, %s1473_s28 }
 0x142   : > { %v693_v42 = vpop.permute.xlu0 %692 }
 0x143   : > { %v703_v43 = vsel %vm700_vm1, %v693_v42, 0.0 }
 0x144   : > { %v711_v44 = vsel %vm1663_vm2, %v703_v43, %v649_v29 }
 0x145   : > { %721 = vrot.lane.b32.xlu1 %v711_v44, %s1473_s28 }
 0x14a   : > { %v695_v45 = vpop.permute.xlu0 %694 }
 0x14b   : > { %v704_v46 = vsel %vm700_vm1, %v695_v45, 0.0 }
 0x14c   : > { %v712_v47 = vsel %vm1663_vm2, %v704_v46, %v678_v30 }
 0x14d   : > { %723 = vrot.lane.b32.xlu2 %v712_v47, %s1473_s28 }
 0x155   : > { %688 = vrot.lane.b32.xlu2 %v591_v48, %s1472_s19  ;;  %s1100_s19 = scalar_lea.hbm %s1821_s6, %s1310_s15 }
 0x156   : > { %s1103_s20 = sshll.u32 %s1100_s19, 4  ;;  %s1104_s20 = int_to_ptr.hbm [resolvable:$true] %s1103_s20 }
 0x1a7   : > { %v724_v57 = vpop.permute.xlu2 %723 }
 0x1a8   : > { %v733_v58 = vsel %vm729_vm3, %v724_v57, 0.0 }
 0x1a9   : > { %v741_v59 = vsel %vm1687_vm4, %v733_v58, %v712_v47 }
 0x1aa   : > { %752 = vrot.lane.b32.xlu2 %v741_v59, %s1474_s30 }
 0x1af   : > { %v689_v60 = vpop.permute.xlu2 %688 }
 0x1b0   : > { %v701_v61 = vsel %vm700_vm1, %v689_v60, 0.0 }
 0x1b1   : > { %v709_v62 = vsel %vm1663_vm2, %v701_v61, %v591_v48  ;;  %v720_v2 = vpop.permute.xlu0 %719 }
 0x1b2   : > { %717 = vrot.lane.b32.xlu0 %v709_v62, %s1473_s28  ;;  %v731_v3 = vsel %vm729_vm3, %v720_v2, 0.0  ;;  %s1406_s28 = sshra.s32 %s1104_s20, 4  ;;  %s1407_s28 = int_to_ptr.hbm [resolvable:$true] %s1406_s28 }
 0x1b3   : > { %v739_v4 = vsel %vm1687_vm4, %v731_v3, %v710_v41  ;;  %p1413_p3 = scmp.lt.s32.totalorder %s1407_s28, %s1821_s6 }
 0x1b7   : > { %v722_v63 = vpop.permute.xlu1 %721 }
 0x1b8   : > { %v732_v0 = vsel %vm729_vm3, %v722_v63, 0.0 }
 0x1b9   : > { %v740_v1 = vsel %vm1687_vm4, %v732_v0, %v711_v44 }
 0x1ba   : > { %750 = vrot.lane.b32.xlu1 %v740_v1, %s1474_s30 }
 0x1c2   : > { %748 = vrot.lane.b32.xlu1 %v739_v4, %s1474_s30 }
 0x204   : > { %v753_v10 = vpop.permute.xlu2 %752 }
 0x205   : > { %v762_v12 = vsel %vm758_vm5, %v753_v10, 0.0 }
 0x206   : > { %v770_v13 = vsel %vm1711_vm6, %v762_v12, %v741_v59 }
 0x207   : > { %v861_v14 = vadd.f32 %v860_v11, %v770_v13 }
 0x209   : > { %v872_v15 = vsel %vm564_vm0, %v861_v14, -inf }
 0x20a   : > { %873 = vmax.xlane.f32.xlu1 %v872_v15 }
 0x224   : > { %v718_v16 = vpop.permute.xlu0 %717 }
 0x225   : > { %v730_v17 = vsel %vm729_vm3, %v718_v16, 0.0  ;;  %v900_v16 = vld [vmem:[%s1742_s12 + $0x8] sm:$0xff] }
 0x226   : > { %v738_v18 = vsel %vm1687_vm4, %v730_v17, %v709_v62  ;;  %1004 = vmatpush.msra.mxu1 %v900_v16 }
 0x227   : > { %746 = vrot.lane.b32.xlu2 %v738_v18, %s1474_s30  ;;  %s1408_s30 = scalar_lea.hbm %s1407_s28, 32 }
 0x228   : > { %p1409_p0 = scmp.ne.s32.totalorder %s1407_s28, %s1408_s30 }
 0x22a   : > { %p1410_p1 = pnand %p1409_p0, %p1558_p5 }
 0x22c   : > { %v751_v19 = vpop.permute.xlu1 %750  ;;  %p1411_p2 = pneg %p1410_p1 }
 0x22d   : > { %v761_v21 = vsel %vm758_vm5, %v751_v19, 0.0 }
 0x22e   : > { %v769_v22 = vsel %vm1711_vm6, %v761_v21, %v740_v1 }
 0x22f   : > { %v838_v23 = vadd.f32 %v837_v20, %v769_v22 }
 0x231   : > { %v869_v24 = vsel %vm564_vm0, %v838_v23, -inf }
 0x232   : > { %870 = vmax.xlane.f32.xlu0 %v869_v24 }
 0x234   : > { %v749_v25 = vpop.permute.xlu1 %748 }
 0x235   : > { %v760_v26 = vsel %vm758_vm5, %v749_v25, 0.0 }
 0x236   : > { %v768_v27 = vsel %vm1711_vm6, %v760_v26, %v739_v4 }
 0x237   : > { %v815_v29 = vadd.f32 %v814_v28, %v768_v27 }
 0x239   : > { %v866_v30 = vsel %vm564_vm0, %v815_v29, -inf }
 0x250   : > { %867 = vmax.xlane.f32.xlu2 %v866_v30 }
 0x27d   : > { %v874_v31 = vpop.xlane.xlu1 %873 }
 0x27e   : > { %v878_v32 = vsub.f32 %v861_v14, %v874_v31 }
 0x280   : > { %v885_v33 = vmul.f32 1.442695, %v878_v32  ;;  %v899_v32 = vld [vmem:[%s1742_s12] sm:$0xff] }
 0x281   : > { %v747_v34 = vpop.permute.xlu2 %746  ;;  %981 = vmatpush.msra.mxu0 %v899_v32 }
 0x282   : > { %1376 = vpow2.f32 %v885_v33  ;;  %v759_v36 = vsel %vm758_vm5, %v747_v34, 0.0 }
 0x283   : > { %v767_v37 = vsel %vm1711_vm6, %v759_v36, %v738_v18 }
 0x284   : > { %v792_v38 = vadd.f32 %v791_v35, %v767_v37 }
 0x286   : > { %v863_v39 = vsel %vm564_vm0, %v792_v38, -inf }
 0x287   : > { %864 = vmax.xlane.f32.xlu2 %v863_v39 }
 0x288   : > { %v1377_v40 = vpop.eup %1376 }
 0x289   : > { %v896_v41 = vsel %vm564_vm0, %v1377_v40, 0.0 }
 0x28a   : > { %897 = vadd.xlane.f32.xlu1 %v896_v41 }
 0x2a5   : > { %v871_v42 = vpop.xlane.xlu0 %870 }
 0x2a6   : > { %v877_v43 = vsub.f32 %v838_v23, %v871_v42 }
 0x2a8   : > { %v883_v44 = vmul.f32 1.442695, %v877_v43 }
 0x2aa   : > { %1378 = vpow2.f32 %v883_v44 }
 0x2b0   : > { %v1379_v45 = vpop.eup %1378 }
 0x2b1   : > { %v893_v46 = vsel %vm564_vm0, %v1379_v45, 0.0 }
 0x2b2   : > { %894 = vadd.xlane.f32.xlu0 %v893_v46 }
 0x2c3   : > { %v868_v47 = vpop.xlane.xlu2 %867 }
 0x2c4   : > { %v876_v48 = vsub.f32 %v815_v29, %v868_v47 }
 0x2c6   : > { %v881_v49 = vmul.f32 1.442695, %v876_v48 }
 0x2c8   : > { %1380 = vpow2.f32 %v881_v49 }
 0x2ce   : > { %v1737_v50 = vpop.eup %1380 }
 0x2cf   : > { %v890_v51 = vsel %vm564_vm0, %v1737_v50, 0.0 }
 0x2d0   : > { %891 = vadd.xlane.f32.xlu2 %v890_v51 }
 0x2fa   : > { %v865_v53 = vpop.xlane.xlu2 %864 }
 0x2fb   : > { %v875_v54 = vsub.f32 %v792_v38, %v865_v53 }
 0x2fd   : > { %v879_v55 = vmul.f32 1.442695, %v875_v54  ;;  %v898_v56 = vpop.xlane.xlu1 %897 }
 0x2fe   : > { %1382 = vrcp.f32 %v898_v56  ;;  %v959_v62 = vand.u32 2147483648, %v898_v56  ;;  %v957_v0 = vand.u32 2147483647, %v898_v56  ;;  %vm953_vm8 = vweird.f32 %v898_v56 }
 0x2ff   : > { %1384 = vpow2.f32 %v879_v55 }
 0x300   : > { %v960_v2 = vor.u32 1.1754944e-38, %v959_v62  ;;  %vm958_vm10 = vcmp.eq.f32.partialorder %v957_v0, 8.507059e+37 }
 0x304   : > { %v1383_v57 = vpop.eup %1382 }
 0x305   : > { %v1745_v58 = vpop.eup %1384  ;;  %v949_v59 = vmul.f32 %v1383_v57, %v898_v56  ;;  %vm954_vm7 = vweird.f32 %v1383_v57 }
 0x306   : > { %v887_v60 = vsel %vm564_vm0, %v1745_v58, 0.0  ;;  %vm955_vm9 = vmor %vm953_vm8, %vm954_vm7 }
 0x307   : > { %v950_v61 = vsub.f32 1.0, %v949_v59  ;;  %888 = vadd.xlane.f32.xlu0 %v887_v60 }
 0x309   : > { %v951_v63 = vmul.f32 %v1383_v57, %v950_v61 }
 0x30b   : > { %v952_v1 = vadd.f32 %v1383_v57, %v951_v63 }
 0x30d   : > { %v956_v3 = vsel %vm955_vm9, %v1383_v57, %v952_v1 }
 0x30e   : > { %v961_v4 = vsel %vm958_vm10, %v960_v2, %v956_v3 }
 0x30f   : > { %v962_v5 = vmul.f32 %v1377_v40, %v961_v4 }
 0x311   : > { %1308 = vmatmul.msk.f32.vlgmr.msra.gmra.mxu3 %vm564_vm0, %v962_v5  ;;  %1058 = vst.msk [vmem:[%s1751_s13 + $0x18] sm:$0xff] %vm564_vm0, %v962_v5 }
 0x325   : > { %v895_v7 = vpop.xlane.xlu0 %894 }
 0x326   : > { %1386 = vrcp.f32 %v895_v7  ;;  %v944_v11 = vand.u32 2147483648, %v895_v7  ;;  %v942_v13 = vand.u32 2147483647, %v895_v7  ;;  %vm938_vm12 = vweird.f32 %v895_v7 }
 0x328   : > { %v945_v15 = vor.u32 1.1754944e-38, %v944_v11  ;;  %vm943_vm14 = vcmp.eq.f32.partialorder %v942_v13, 8.507059e+37 }
 0x32c   : > { %v1387_v8 = vpop.eup %1386 }
 0x32d   : > { %v934_v9 = vmul.f32 %v1387_v8, %v895_v7  ;;  %vm939_vm11 = vweird.f32 %v1387_v8 }
 0x32e   : > { %vm940_vm13 = vmor %vm938_vm12, %vm939_vm11 }
 0x32f   : > { %v935_v10 = vsub.f32 1.0, %v934_v9 }
 0x331   : > { %v936_v12 = vmul.f32 %v1387_v8, %v935_v10 }
 0x333   : > { %v937_v14 = vadd.f32 %v1387_v8, %v936_v12 }
 0x335   : > { %v941_v17 = vsel %vm940_vm13, %v1387_v8, %v937_v14 }
 0x336   : > { %v946_v18 = vsel %vm943_vm14, %v945_v15, %v941_v17 }
 0x337   : > { %v947_v19 = vmul.f32 %v1379_v45, %v946_v18 }
 0x339   : > { %1307 = vmatmul.msk.f32.vlgmr.msra.gmra.mxu2 %vm564_vm0, %v947_v19  ;;  %1057 = vst.msk [vmem:[%s1751_s13 + $0x10] sm:$0xff] %vm564_vm0, %v947_v19 }
 0x343   : > { %v892_v20 = vpop.xlane.xlu2 %891 }
 0x344   : > { %1388 = vrcp.f32 %v892_v20  ;;  %v929_v24 = vand.u32 2147483648, %v892_v20  ;;  %v927_v26 = vand.u32 2147483647, %v892_v20  ;;  %vm923_vm1 = vweird.f32 %v892_v20 }
 0x346   : > { %v930_v28 = vor.u32 1.1754944e-38, %v929_v24  ;;  %vm928_vm3 = vcmp.eq.f32.partialorder %v927_v26, 8.507059e+37 }
 0x34a   : > { %v1389_v21 = vpop.eup %1388 }
 0x34b   : > { %v919_v22 = vmul.f32 %v1389_v21, %v892_v20  ;;  %vm924_vm15 = vweird.f32 %v1389_v21 }
 0x34c   : > { %vm925_vm2 = vmor %vm923_vm1, %vm924_vm15 }
 0x34d   : > { %v920_v23 = vsub.f32 1.0, %v919_v22 }
 0x34f   : > { %v921_v25 = vmul.f32 %v1389_v21, %v920_v23 }
 0x351   : > { %v922_v27 = vadd.f32 %v1389_v21, %v921_v25 }
 0x353   : > { %v926_v29 = vsel %vm925_vm2, %v1389_v21, %v922_v27 }
 0x354   : > { %v931_v30 = vsel %vm928_vm3, %v930_v28, %v926_v29 }
 0x355   : > { %v932_v31 = vmul.f32 %v1737_v50, %v931_v30 }
 0x357   : > { %1306 = vmatmul.msk.f32.vlgmr.msra.gmra.mxu1 %vm564_vm0, %v932_v31  ;;  %1056 = vst.msk [vmem:[%s1751_s13 + $0x8] sm:$0xff] %vm564_vm0, %v932_v31 }
 0x37a   : > { %v889_v33 = vpop.xlane.xlu0 %888 }
 0x37b   : > { %1390 = vrcp.f32 %v889_v33  ;;  %v914_v37 = vand.u32 2147483648, %v889_v33  ;;  %v912_v39 = vand.u32 2147483647, %v889_v33  ;;  %vm908_vm5 = vweird.f32 %v889_v33 }
 0x37d   : > { %v915_v41 = vor.u32 1.1754944e-38, %v914_v37  ;;  %vm913_vm7 = vcmp.eq.f32.partialorder %v912_v39, 8.507059e+37 }
 0x381   : > { %v1391_v34 = vpop.eup %1390 }
 0x382   : > { %v904_v35 = vmul.f32 %v1391_v34, %v889_v33  ;;  %vm909_vm4 = vweird.f32 %v1391_v34 }
 0x383   : > { %vm910_vm6 = vmor %vm908_vm5, %vm909_vm4 }
 0x384   : > { %v905_v36 = vsub.f32 1.0, %v904_v35 }
 0x386   : > { %v906_v38 = vmul.f32 %v1391_v34, %v905_v36 }
 0x388   : > { %v907_v40 = vadd.f32 %v1391_v34, %v906_v38 }
 0x38a   : > { %v911_v42 = vsel %vm910_vm6, %v1391_v34, %v907_v40 }
 0x38b   : > { %v916_v43 = vsel %vm913_vm7, %v915_v41, %v911_v42 }
 0x38c   : > { %v917_v44 = vmul.f32 %v1745_v58, %v916_v43 }
 0x38e   : > { %1305 = vmatmul.msk.f32.vlgmr.msra.gmra.mxu0 %vm564_vm0, %v917_v44  ;;  %1055 = vst.msk [vmem:[%s1751_s13] sm:$0xff] %vm564_vm0, %v917_v44  ;;  %s1412_s13 = scalar_lea.hbm %s1821_s6, 64 }
 0x38f   : > { %p1414_p4 = scmp.lt.s32.totalorder %s1412_s13, %s1408_s30 }
 0x391   : > { %p1415_p6 = por %p1414_p4, %p1413_p3 }
 0x393   : > { %p1416_p7 = pnand %p1415_p6, %p1411_p2 }
 0x394   : > { %v1052_v45 = vpop.f32.mrf.mxu3 }
 0x395   : > { %1068 = vrot.lane.b32.xlu0 %v1052_v45, %s1475_s9 }
 0x3bc   : > { %v1029_v46 = vpop.f32.mrf.mxu2 }
 0x3bd   : > { %1064 = vrot.lane.b32.xlu2 %v1029_v46, %s1476_s7 }
 0x3be   : > { %1419 = shalt.err (!%p1416_p7)
}
 0x3bf   : > { %s1477_s17 = smov 128   ;;  %s1478_s15 = smov 256   ;;  %vm1072_vm8 = vcmask 130048   ;;  %vm1074_vm9 = vcmask 195584   ;;  %vm1076_vm10 = vcmask 261120  }
 0x3c0   : > { %s1479_s16 = smov 8   ;;  %p530_p8 = scmp.lt.s32.totalorder %s1462_s24, 1 }
 0x3c1   : > { %1313 = dma.vmem_to_hbm [thread:$0]  (%p1558_p5), %s1102_s14, 512, %s1104_s20, %s1086_s27, %s1477_s17, %s1478_s15, %s1479_s16  }
 0x3c2   : > { %s1841_s24 = smov (!%p530_p8, %s1462_s24), 1 }
 0x3c3   : > { %s1288_s18 = sshll.u32 %s1841_s24, 3 }
 0x3c4   : > { %s536_s28 = scalar_lea.vmem %s1820_s5, %s1288_s18 }
 0x3d4   : > { %v1006_v47 = vpop.f32.mrf.mxu1 }
 0x3d5   : > { %1060 = vrot.lane.b32.xlu1 %v1006_v47, %s1479_s16 }
 0x407   : > { %v1069_v52 = vpop.permute.xlu0 %1068 }
 0x40b   : > { %v983_v48 = vpop.f32.mrf.mxu0 }
 0x417   : > { %v1065_v50 = vpop.permute.xlu2 %1064 }
 0x447   : > { %v1061_v49 = vpop.permute.xlu1 %1060 }
 0x448   : > { %v1071_v51 = vsel %vm564_vm0, %v983_v48, %v1061_v49 }
 0x449   : > { %v1073_v53 = vsel %vm1072_vm8, %v1071_v51, %v1065_v50 }
 0x44a   : > { %v1075_v54 = vsel %vm1074_vm9, %v1073_v53, %v1069_v52 }
 0x44b   : > { %1077 = vst.msk [vmem:[%s536_s28] sm:$0xff] %vm1076_vm10, %v1075_v54 }
 0x44c PF: > { %s1128_s24 = sand.u32 1, %s1450_s21   ;;  %p1316_p5 = pnand %p1273_p10, %p1569_p9 }
 0x44d   : > { %s1129_s8 = scalar_lea.sflag [#allocation7], %s1128_s24 }
 0x44e   : > { %p1317_p11 = pneg %p1316_p5 }
 0x450   : > { %1445 = dma.done.wait (%p1317_p11), %s1129_s8, 512  }
 0x451   : > { %1447 = vsyncadd (%p1317_p11), %s1129_s8, 4294966784  ;;  %s20_s26 = sadd.s32 1, %s1470_s26   ;;  %s1833_s21 = smov %s1454_s22 }
 0x452   : > { %p17_p12 = scmp.ge.s32.totalorder %s20_s26, 4   ;;  %s1834_s22 = smov %s1458_s23 }
 0x453   : > { %s1835_s23 = smov %s1567_s10  ;;  %s1836_s24 = smov %s1466_s25 }
 0x454   : > { %s1837_s25 = smov %s1839_s29  ;;  %19 = sbr.rel (!%p17_p12) target bundleno = 6 (0x6), region = 269 }
 0x459   :  { %1135 = vsyncpa [#allocation7], 1 }
 0x45a   :  { %1137 = vsyncpa [#allocation7 + $0x1], 1 }

</bundles_post_ra>
